<compile_context>
chip_gen: v7x
topology: tpu7x:2x2x1
jax: 0.10.0
libtpu: 0.0.40
codegen_flags: <defaults>
</compile_context>

<pallas_src>
import jax
import jax.numpy as jnp
from jax.experimental import pallas as pl
from jax.experimental.pallas import tpu as pltpu


def _round_up(x: int, m: int) -> int:
    return (x + m - 1) // m * m


# --------------------------------------------------------------------------- kernels
def _lm_head_kernel_multik(x_ref, w_ref, b_ref, o_ref, acc_ref):
    # x_ref: (tm, tk)  w_ref: (tk, tn)  b_ref: (1, tn) f32  o_ref: (tm, tn)
    # acc_ref: f32 VMEM scratch (tm, tn), resident across the K grid axis (last axis).
    k = pl.program_id(2)

    @pl.when(k == 0)
    def _init():
        acc_ref[...] = jnp.zeros_like(acc_ref)

    acc_ref[...] += jnp.dot(
        x_ref[...], w_ref[...], preferred_element_type=jnp.float32
    )

    @pl.when(k == pl.num_programs(2) - 1)
    def _finalize():
        o_ref[...] = (acc_ref[...] + b_ref[...]).astype(o_ref.dtype)


def _lm_head_kernel_fused(x_ref, w_ref, b_ref, o_ref):
    # K axis collapsed: single MXU pass, no accumulator scratch / pl.when branches.
    acc = jnp.dot(x_ref[...], w_ref[...], preferred_element_type=jnp.float32)
    o_ref[...] = (acc + b_ref[...]).astype(o_ref.dtype)


# --------------------------------------------------------------- tile / VMEM planning
def _device_tile_config():
    """Generation-specific tile defaults + scoped-VMEM budget (bytes)."""
    try:
        kind = jax.devices()[0].device_kind.lower()
    except Exception:  # pragma: no cover - defensive
        kind = ""
    if "v6" in kind:
        # 128 MiB VMEM, 918 TF/s MXU, ridge ~656 FLOP/byte -> 1024x2048 (AI ~= 683)
        return dict(tm=1024, tn=2048, tk=512, vmem_cap=100 << 20)
    if "7x" in kind or "v7" in kind:
        # 64 MiB VMEM per TC, 2 TCs -> keep the working set modest (AI ~= 341 > ~311)
        return dict(tm=512, tn=1024, tk=512, vmem_cap=48 << 20)
    if "v5p" in kind:
        return dict(tm=512, tn=1024, tk=512, vmem_cap=96 << 20)
    if "v5" in kind:
        # v5e: weakest HBM, 197 TF/s MXU, ridge ~240 -> 512x512 (AI = 256)
        return dict(tm=512, tn=512, tk=512, vmem_cap=96 << 20)
    return dict(tm=512, tn=512, tk=512, vmem_cap=48 << 20)


def _vmem_bytes(tm, tn, tk, in_itemsize, out_itemsize, multi_k):
    x = 2 * tm * tk * in_itemsize          # double-buffered X tile
    w = 2 * tk * tn * in_itemsize          # double-buffered W tile
    o = 2 * tm * tn * out_itemsize         # double-buffered output tile
    b = 2 * tn * 4                         # bias tile (f32)
    acc = tm * tn * 4 if multi_k else 0    # f32 accumulator scratch
    return x + w + o + b + acc


# ----------------------------------------------------------------------------- module
class GLMHeadPallas:
    """logits = features @ W + b with W kept pre-transposed as [hidden_size, num_pc].

    Parameter prep (dtype cast + padding to tile multiples) happens once here,
    not per forward call.
    """

    def __init__(self, weight, bias, *, compute_dtype=jnp.bfloat16, out_dtype=None,
                 tm=None, tn=None, tk=None, allow_single_k=True):
        H, P = weight.shape
        assert bias.shape == (P,)
        cfg = _device_tile_config()
        self.cfg_tm = int(tm or cfg["tm"])
        tn = int(tn or cfg["tn"])
        tk = int(tk or cfg["tk"])
        vmem_cap = cfg["vmem_cap"]

        self.H, self.P = H, P
        self.compute_dtype = compute_dtype
        self.out_dtype = out_dtype
        in_itemsize = jnp.dtype(compute_dtype if compute_dtype is not None
                                else weight.dtype).itemsize

        # Lane-dense output tiles (multiple of 128), clamped to padded problem dims.
        self.tn = min(tn, _round_up(P, 128))
        H_aligned = _round_up(H, 128)

        # Collapse the K axis into one tile if the fused working set fits in VMEM.
        out_itemsize = 4  # conservative (actual out dtype chosen per call)
        if allow_single_k and _vmem_bytes(
                self.cfg_tm, self.tn, H_aligned, in_itemsize, out_itemsize,
                multi_k=False) <= vmem_cap:
            self.tk = H_aligned
        else:
            self.tk = min(tk, H_aligned)
        self.H_pad = _round_up(H, self.tk)
        self.P_pad = _round_up(P, self.tn)
        self.single_k = (self.H_pad // self.tk) == 1

        # --- hoisted, cached parameter prep: cast + pad the vocab-sized weight ONCE ---
        w = weight
        if compute_dtype is not None:
            w = w.astype(compute_dtype)
        if (self.H_pad, self.P_pad) != (H, P):
            w = jnp.pad(w, ((0, self.H_pad - H), (0, self.P_pad - P)))
        b = bias.astype(jnp.float32).reshape(1, P)
        if self.P_pad != P:
            b = jnp.pad(b, ((0, 0), (0, self.P_pad - P)))
        self.w_pad = w
        self.b_pad = b

        est = _vmem_bytes(self.cfg_tm, self.tn, self.tk, in_itemsize, out_itemsize,
                          multi_k=not self.single_k)
        self.vmem_limit = int(min(vmem_cap, max(est + (4 << 20), 32 << 20)))

    def __call__(self, features):
        B, S, H = features.shape
        assert H == self.H, "hidden_size mismatch"
        M = B * S
        out_dtype = self.out_dtype if self.out_dtype is not None else features.dtype

        x2d = features.reshape(M, H)
        if self.compute_dtype is not None:
            x2d = x2d.astype(self.compute_dtype)

        tn, tk = self.tn, self.tk
        tm = min(self.cfg_tm, _round_up(M, 8))
        M_pad = _round_up(M, tm)
        if (M_pad, self.H_pad) != (M, H):
            x2d = jnp.pad(x2d, ((0, M_pad - M), (0, self.H_pad - H)))

        gm = M_pad // tm
        gn = self.P_pad // tn
        gk = self.H_pad // tk

        # Put the larger parallel axis first so a 2-TC (v7x) megacore split stays balanced.
        n_major = gn > gm

        out_bytes = M_pad * self.P_pad * jnp.dtype(out_dtype).itemsize
        cost = pl.CostEstimate(
            flops=2 * M_pad * self.H_pad * self.P_pad,
            transcendentals=0,
            bytes_accessed=(
                int(self.w_pad.size) * self.w_pad.dtype.itemsize * gm   # W streamed per M tile
                + int(x2d.size) * x2d.dtype.itemsize * gn               # X streamed per P tile
                + int(self.b_pad.size) * 4 * gm
                + out_bytes
            ),
        )

        if self.single_k:
            if n_major:
                grid = (gn, gm)
                x_map = lambda j, i: (i, 0)
                w_map = lambda j, i: (0, j)
                b_map = lambda j, i: (0, j)
                o_map = lambda j, i: (i, j)
            else:
                grid = (gm, gn)
                x_map = lambda i, j: (i, 0)
                w_map = lambda i, j: (0, j)
                b_map = lambda i, j: (0, j)
                o_map = lambda i, j: (i, j)
            kernel = _lm_head_kernel_fused
            scratch = []
            semantics = ("parallel", "parallel")
        else:
            if n_major:
                grid = (gn, gm, gk)
                x_map = lambda j, i, k: (i, k)
                w_map = lambda j, i, k: (k, j)
                b_map = lambda j, i, k: (0, j)
                o_map = lambda j, i, k: (i, j)
            else:
                grid = (gm, gn, gk)
                x_map = lambda i, j, k: (i, k)
                w_map = lambda i, j, k: (k, j)
                b_map = lambda i, j, k: (0, j)
                o_map = lambda i, j, k: (i, j)
            kernel = _lm_head_kernel_multik
            scratch = [pltpu.VMEM((tm, tn), jnp.float32)]
            semantics = ("parallel", "parallel", "arbitrary")

        out = pl.pallas_call(
            kernel,
            out_shape=jax.ShapeDtypeStruct((M_pad, self.P_pad), out_dtype),
            grid_spec=pltpu.PrefetchScalarGridSpec(
                num_scalar_prefetch=0,
                grid=grid,
                in_specs=[
                    pl.BlockSpec((tm, tk), x_map),   # X tile
                    pl.BlockSpec((tk, tn), w_map),   # W tile
                    pl.BlockSpec((1, tn), b_map),    # bias tile (f32)
                ],
                out_specs=pl.BlockSpec((tm, tn), o_map),
                scratch_shapes=scratch,
            ),
            compiler_params=pltpu.CompilerParams(
                dimension_semantics=semantics,
                vmem_limit_bytes=self.vmem_limit,
            ),
            cost_estimate=cost,
        )(x2d, self.w_pad, self.b_pad)

        return out[:M, :self.P].reshape(B, S, self.P)


def glm_head_forward(features, weight, bias, **kwargs):
    """One-shot convenience wrapper (prefer building GLMHeadPallas once and reusing)."""
    return GLMHeadPallas(weight, bias, **kwargs)(features)


if __name__ == "__main__":
    # Small deterministic config consistent with the module's forward:
    # features [batch, seq_len, hidden_size] -> logits [batch, seq_len, num_pc]
    batch, seq_len, hidden_size, num_pc = 2, 8, 32, 64

    key = jax.random.PRNGKey(0)
    k_x, k_w, k_b = jax.random.split(key, 3)

    features = jax.random.normal(k_x, (batch, seq_len, hidden_size), dtype=jnp.float32)
    # Deterministic synthetic parameters (no checkpoint load); weight kept as [H, P].
    weight = (
        jax.random.normal(k_w, (hidden_size, num_pc), dtype=jnp.float32)
        * (1.0 / hidden_size ** 0.5)
    )
    bias = jax.random.normal(k_b, (num_pc,), dtype=jnp.float32) * 0.01

    ref_f32 = features @ weight + bias

    # --- f32 path (single-K fused kernel): exact check against plain JAX ---
    head_f32 = GLMHeadPallas(weight, bias, compute_dtype=None)
    logits_f32 = head_f32(features)
    jax.block_until_ready(logits_f32)
    assert logits_f32.shape == (batch, seq_len, num_pc)
    assert jnp.allclose(logits_f32, ref_f32, atol=1e-5, rtol=1e-5)

    # --- default bf16 compute path (full-rate MXU, f32 accumulation) ---
    head_bf16 = GLMHeadPallas(weight, bias)  # compute_dtype=bf16, params prepped once
    logits_bf16 = head_bf16(features)
    jax.block_until_ready(logits_bf16)
    ref_bf16 = (
        jnp.dot(
            features.reshape(-1, hidden_size).astype(jnp.bfloat16),
            weight.astype(jnp.bfloat16),
            preferred_element_type=jnp.float32,
        ).reshape(batch, seq_len, num_pc)
        + bias
    )
    assert logits_bf16.shape == (batch, seq_len, num_pc)
    assert jnp.allclose(logits_bf16, ref_bf16, atol=1e-3, rtol=1e-3)
    assert jnp.allclose(logits_bf16, ref_f32, atol=5e-2, rtol=5e-2)

    # --- bf16 logits output option ---
    head_bf16_out = GLMHeadPallas(weight, bias, out_dtype=jnp.bfloat16)
    logits_bf16_out = head_bf16_out(features)
    jax.block_until_ready(logits_bf16_out)
    assert logits_bf16_out.dtype == jnp.bfloat16
    assert jnp.allclose(logits_bf16_out.astype(jnp.float32), ref_f32, atol=1e-1, rtol=1e-1)

    # --- multi-K accumulator fallback path (forced, larger hidden to get >1 K tile) ---
    hidden_big = 256
    k_x2, k_w2, k_b2 = jax.random.split(jax.random.PRNGKey(1), 3)
    feats2 = jax.random.normal(k_x2, (batch, seq_len, hidden_big), dtype=jnp.float32)
    w2 = jax.random.normal(k_w2, (hidden_big, num_pc), dtype=jnp.float32) / hidden_big ** 0.5
    b2 = jax.random.normal(k_b2, (num_pc,), dtype=jnp.float32) * 0.01
    head_multik = GLMHeadPallas(w2, b2, tk=128, allow_single_k=False)
    assert not head_multik.single_k
    logits_mk = head_multik(feats2)
    jax.block_until_ready(logits_mk)
    ref_mk = (
        jnp.dot(
            feats2.reshape(-1, hidden_big).astype(jnp.bfloat16),
            w2.astype(jnp.bfloat16),
            preferred_element_type=jnp.float32,
        ).reshape(batch, seq_len, num_pc)
        + b2
    )
    assert jnp.allclose(logits_mk, ref_mk, atol=2e-3, rtol=2e-3)

    print("KERNEL_OK")
</pallas_src>

<mosaic_0001>
module attributes {stable_mosaic.version = 11 : i64} {
  func.func @_lm_head_kernel_fused(%arg0: i32, %arg1: i32, %arg2: memref<16x128xf32, #tpu.memory_space<vmem>>, %arg3: memref<128x128xf32, #tpu.memory_space<vmem>>, %arg4: memref<1x128xf32, #tpu.memory_space<vmem>>, %arg5: memref<16x128xf32, #tpu.memory_space<vmem>>) attributes {dimension_semantics = [#tpu.dimension_semantics<parallel>, #tpu.dimension_semantics<parallel>], iteration_bounds = array<i64: 1, 1>, scalar_prefetch = 0 : i64, scratch_operands = 0 : i64, tpu.core_type = #tpu.core_type<tc>, window_params = [{transform_indices = @transform_0, window_bounds = array<i64: 16, 128>}, {transform_indices = @transform_1, window_bounds = array<i64: 128, 128>}, {transform_indices = @transform_2, window_bounds = array<i64: 1, 128>}, {transform_indices = @transform_3, window_bounds = array<i64: 16, 128>}]} {
    %c0 = arith.constant 0 : index
    %c0_0 = arith.constant 0 : index
    %0 = vector.load %arg2[%c0, %c0_0] : memref<16x128xf32, #tpu.memory_space<vmem>>, vector<16x128xf32>
    %c0_1 = arith.constant 0 : index
    %c0_2 = arith.constant 0 : index
    %1 = vector.load %arg3[%c0_1, %c0_2] : memref<128x128xf32, #tpu.memory_space<vmem>>, vector<128x128xf32>
    %cst = arith.constant dense<0.000000e+00> : vector<16x128xf32>
    %2 = tpu.matmul %0, %1, %cst {dimension_numbers = #tpu.dot_dimension_numbers<[1], [0], [0], [1], [0, 0, 1, 1], [], []>} : vector<16x128xf32>, vector<128x128xf32>, vector<16x128xf32> -> vector<16x128xf32>
    %c0_3 = arith.constant 0 : index
    %c0_4 = arith.constant 0 : index
    %3 = vector.load %arg4[%c0_3, %c0_4] : memref<1x128xf32, #tpu.memory_space<vmem>>, vector<1x128xf32>
    %4 = vector.broadcast %3 : vector<1x128xf32> to vector<16x128xf32>
    %5 = arith.addf %2, %4 : vector<16x128xf32>
    %c0_5 = arith.constant 0 : index
    %c0_6 = arith.constant 0 : index
    %6 = vector.load %arg5[%c0_5, %c0_6] : memref<16x128xf32, #tpu.memory_space<vmem>>, vector<16x128xf32>
    tpu.vector_store %arg5[%c0_5, %c0_6], %5 {strides = array<i32>} : memref<16x128xf32, #tpu.memory_space<vmem>>, vector<16x128xf32>,
    return
  }
  func.func @transform_0(%arg0: i32, %arg1: i32) -> (i32, i32) {
    %c0_i32 = arith.constant 0 : i32
    %c0_i32_0 = arith.constant 0 : i32
    return %arg0, %c0_i32 : i32, i32
  }
  func.func @transform_1(%arg0: i32, %arg1: i32) -> (i32, i32) {
    %c0_i32 = arith.constant 0 : i32
    %c0_i32_0 = arith.constant 0 : i32
    return %c0_i32, %arg1 : i32, i32
  }
  func.func @transform_2(%arg0: i32, %arg1: i32) -> (i32, i32) {
    %c0_i32 = arith.constant 0 : i32
    %c0_i32_0 = arith.constant 0 : i32
    return %c0_i32, %arg1 : i32, i32
  }
  func.func @transform_3(%arg0: i32, %arg1: i32) -> (i32, i32) {
    %c0_i32 = arith.constant 0 : i32
    return %arg0, %arg1 : i32, i32
  }
}

</mosaic_0001>

<bundles_post_ra>
// kernel: tpu_custom_call.1
= control target key start
LH: loop header
LB: loop body
LE: loop exit
PB: predicated region body
PF: predicated region fallthrough
CT: control target
= control target key end

     0   :  { %8 = vsyncpa [#allocation3], 0  ;;  %s399_s0 = inlined_call_operand.hbm [shape: f32[16,128], index: 0, kind: input, shape index: {}]   ;;  %s400_s1 = inlined_call_operand.hbm [shape: f32[128,128], index: 1, kind: input, shape index: {}]   ;;  %s401_s2 = inlined_call_operand.vmem [shape: f32[1,128], index: 2, kind: input, shape index: {}]   ;;  %s402_s3 = inlined_call_operand.hbm [shape: f32[16,128], index: 3, kind: output, shape index: {}]  }
   0x1   :  { %9 = vsyncpa [#allocation6], 0 }
   0x2   :  { %10 = vsyncpa [#allocation4], 0  ;;  %s326_s12 = smov [#allocation2]   ;;  %s254_s16 = scalar_lea.hbm %s399_s0, 256 }
   0x3   :  { %s16_s13 = sshll.u32 %s326_s12, 4  ;;  %p255_p0 = scmp.ne.s32.totalorder %s399_s0, %s254_s16  ;;  %s17_s13 = int_to_ptr.vmem [resolvable:$true] %s16_s13 }
   0x4   :  { %p258_p1 = scmp.lt.u32.totalorder %s254_s16, %s399_s0 }
   0x6   :  { %p260_p2 = pnand %p258_p1, %p255_p0 }
   0x8   :  { %263 = shalt.err (!%p260_p2)
}
   0x9   :  { %s264_s21 = scalar_lea.vmem %s17_s13, 256  ;;  %p269_p4 = scmp.lt.s32.totalorder %s17_s13, %s17_s13 }
   0xa   :  { %p265_p3 = scmp.ne.s32.totalorder %s17_s13, %s264_s21  ;;  %p270_p5 = scmp.lt.s32.totalorder %s264_s21, %s264_s21 }
   0xc   :  { %p271_p6 = por %p270_p5, %p269_p4 }
   0xe   :  { %p272_p7 = pnand %p271_p6, %p265_p3 }
  0x10   :  { %275 = shalt.err (!%p272_p7)
}
  0x11   :  { %s327_s22 = smov 128   ;;  %s328_s23 = smov 8  }
  0x12   :  { %22 = dma.hbm_to_vmem [thread:$0]  %s399_s0, 256, %s17_s13, [#allocation3], %s327_s22, %s327_s22, %s328_s23  }
  0x13   :  { %s329_s26 = smov [#allocation5]   ;;  %s276_s30 = scalar_lea.hbm %s400_s1, 2048 }
  0x14   :  { %s28_s27 = sshll.u32 %s329_s26, 4  ;;  %p277_p8 = scmp.ne.s32.totalorder %s400_s1, %s276_s30  ;;  %s29_s27 = int_to_ptr.vmem [resolvable:$true] %s28_s27 }
  0x15   :  { %p280_p9 = scmp.lt.u32.totalorder %s276_s30, %s400_s1 }
  0x17   :  { %p282_p10 = pnand %p280_p9, %p277_p8 }
  0x19   :  { %285 = shalt.err (!%p282_p10)
}
  0x1a   :  { %s286_s8 = scalar_lea.vmem %s29_s27, 2048  ;;  %p291_p12 = scmp.lt.s32.totalorder %s29_s27, %s29_s27 }
  0x1b   :  { %p287_p11 = scmp.ne.s32.totalorder %s29_s27, %s286_s8  ;;  %p292_p13 = scmp.lt.s32.totalorder %s286_s8, %s286_s8 }
  0x1d   :  { %p293_p0 = por %p292_p13, %p291_p12 }
  0x1f   :  { %p294_p1 = pnand %p293_p0, %p287_p11 }
  0x21   :  { %297 = shalt.err (!%p294_p1)
}
  0x22   :  { %34 = dma.hbm_to_vmem [thread:$0]  %s400_s1, 2048, %s29_s27, [#allocation6], %s327_s22, %s327_s22, %s328_s23  }
  0x23   :  { %320 = dma.done.wait [#allocation3], 256  }
  0x24   :  { %321 = vsyncadd [#allocation3], 4294967040 }
  0x25   :  { %322 = dma.done.wait [#allocation6], 2048  }
  0x26   :  { %323 = vsyncadd [#allocation6], 4294965248  ;;  %v45_v0 = vld [vmem:[#allocation5] sm:$0xff]  ;;  %v46_v1 = vld [vmem:[#allocation5 + $0x8] sm:$0xff]  ;;  %s330_s11 = smov [#allocation7]  }
  0x27   :  { %v47_v2 = vld [vmem:[#allocation5 + $0x10] sm:$0xff]  ;;  %v217_v3 = vpack.c.bf16 %v46_v1, %v45_v0  ;;  %v48_v4 = vld [vmem:[#allocation5 + $0x18] sm:$0xff]  ;;  %v49_v6 = vld [vmem:[#allocation5 + $0x20] sm:$0xff]  ;;  %s150_s12 = sshll.u32 %s330_s11, 4  ;;  %s151_s12 = int_to_ptr.vmem [resolvable:$true] %s150_s12 }
  0x28   :  { %v221_v5 = vpack.c.bf16 %v48_v4, %v47_v2  ;;  %v50_v7 = vld [vmem:[#allocation5 + $0x28] sm:$0xff]  ;;  %v43_v9 = vld [vmem:[#allocation2] sm:$0xff]  ;;  %v52_v11 = vld [vmem:[#allocation5 + $0x38] sm:$0xff]  ;;  %s298_s13 = scalar_lea.vmem %s151_s12, 256  ;;  %p303_p3 = scmp.lt.s32.totalorder %s151_s12, %s151_s12 }
  0x29   :  { %218 = vmatprep.subr.bf16.mxu0 %v217_v3  ;;  %v225_v8 = vpack.c.bf16 %v50_v7, %v49_v6  ;;  %v51_v10 = vld [vmem:[#allocation5 + $0x30] sm:$0xff]  ;;  %214 = vmatprep.mubr.f32.mxu0 %v43_v9  ;;  %v53_v13 = vld [vmem:[#allocation5 + $0x40] sm:$0xff]  ;;  %v54_v14 = vld [vmem:[#allocation5 + $0x48] sm:$0xff]  ;;  %p299_p2 = scmp.ne.s32.totalorder %s151_s12, %s298_s13  ;;  %p304_p4 = scmp.lt.s32.totalorder %s298_s13, %s298_s13 }
  0x2a   :  { %220 = vmatpush3.bf16.msra.mxu0 %v217_v3  ;;  %v229_v12 = vpack.c.bf16 %v52_v11, %v51_v10  ;;  %v233_v15 = vpack.c.bf16 %v54_v14, %v53_v13  ;;  %v55_v16 = vld [vmem:[#allocation5 + $0x50] sm:$0xff]  ;;  %v56_v17 = vld [vmem:[#allocation5 + $0x58] sm:$0xff]  ;;  %v57_v19 = vld [vmem:[#allocation5 + $0x60] sm:$0xff] }
  0x2b   :  { %222 = vmatprep.subr.bf16.mxu0 %v221_v5  ;;  %v237_v18 = vpack.c.bf16 %v56_v17, %v55_v16  ;;  %v58_v20 = vld [vmem:[#allocation5 + $0x68] sm:$0xff]  ;;  %v59_v22 = vld [vmem:[#allocation5 + $0x70] sm:$0xff]  ;;  %v60_v23 = vld [vmem:[#allocation5 + $0x78] sm:$0xff]  ;;  %p305_p5 = por %p304_p4, %p303_p3 }
  0x2c   :  { %v241_v21 = vpack.c.bf16 %v58_v20, %v57_v19  ;;  %v245_v24 = vpack.c.bf16 %v60_v23, %v59_v22  ;;  %v44_v25 = vld [vmem:[#allocation2 + $0x8] sm:$0xff]  ;;  %v163_v26 = vld [vmem:[%s401_s2] ss:$0 sm:$0xff] }
  0x2d   :  { %p306_p6 = pnand %p305_p5, %p299_p2 }
  0x2e   :  { %224 = vmatpush3.bf16.msra.mxu0 %v221_v5 }
  0x2f   :  { %226 = vmatprep.subr.bf16.mxu0 %v225_v8 }
  0x32   :  { %228 = vmatpush3.bf16.msra.mxu0 %v225_v8 }
  0x33   :  { %230 = vmatprep.subr.bf16.mxu0 %v229_v12 }
  0x36   :  { %232 = vmatpush3.bf16.msra.mxu0 %v229_v12 }
  0x37   :  { %234 = vmatprep.subr.bf16.mxu0 %v233_v15 }
  0x3a   :  { %236 = vmatpush3.bf16.msra.mxu0 %v233_v15 }
  0x3b   :  { %238 = vmatprep.subr.bf16.mxu0 %v237_v18 }
  0x3e   :  { %240 = vmatpush3.bf16.msra.mxu0 %v237_v18 }
  0x3f   :  { %242 = vmatprep.subr.bf16.mxu0 %v241_v21 }
  0x42   :  { %244 = vmatpush3.bf16.msra.mxu0 %v241_v21 }
  0x43   :  { %246 = vmatprep.subr.bf16.mxu0 %v245_v24 }
  0x46   :  { %248 = vmatpush3.bf16.msra.mxu0 %v245_v24 }
  0x49   :  { %215 = vmatmul.mubr.f32.vlgmr.msra.gmra.mrb[0].mxu0 %v44_v25 }
 0x11c   :  { %v216_v27 = vpop.f32.mrb[0].mxu0 }
 0x11d   :  { %v140_v28 = vadd.f32 %v216_v27, %v163_v26  ;;  %v134_v29 = vpop.f32.mrb[1].mxu0 }
 0x11e   :  { %v135_v30 = vadd.f32 %v163_v26, %v134_v29 }
 0x11f   :  { %144 = vst [vmem:[#allocation7 + $0x8] sm:$0xff] %v140_v28 }
 0x120   :  { %143 = vst [vmem:[#allocation7] sm:$0xff] %v135_v30 }
 0x121   :  { %309 = shalt.err (!%p306_p6)
}
 0x122   :  { %s310_s2 = scalar_lea.hbm %s402_s3, 256 }
 0x123   :  { %p311_p7 = scmp.ne.s32.totalorder %s402_s3, %s310_s2  ;;  %p314_p8 = scmp.lt.u32.totalorder %s310_s2, %s402_s3 }
 0x125   :  { %p316_p9 = pnand %p314_p8, %p311_p7 }
 0x127   :  { %319 = shalt.err (!%p316_p9)
}
 0x128   :  { %156 = dma.vmem_to_hbm [thread:$0]  %s151_s12, 256, %s402_s3, [#allocation4], %s327_s22, %s327_s22, %s328_s23  }
 0x129   :  { %324 = dma.done.wait [#allocation4], 256  }
 0x12a   :  { %325 = vsyncadd [#allocation4], 4294967040 }
 0x12b   :  { %160 = vsyncpa [#allocation3], 1 }
 0x12c   :  { %161 = vsyncpa [#allocation6], 1 }
 0x12d   :  { %162 = vsyncpa [#allocation4], 1 }

</bundles_post_ra>
